<compile_context>
chip_gen: v7x
topology: tpu7x:2x2x1
jax: 0.10.0
libtpu: 0.0.40
codegen_flags: <defaults>
</compile_context>

<pallas_src>
import functools
import math

import jax
import jax.numpy as jnp
from jax.experimental import pallas as pl
from jax.experimental.pallas import tpu as pltpu

_LANE = 128
_SUBLANE = 8
_HIDDEN = 256


def _round_up(x, m):
    return (x + m - 1) // m * m


def _leaky_relu(x):
    return jnp.where(x > 0, x, 0.2 * x)


def _bcast_spec(shape):
    # Whole-array block re-used for every batch tile (weights/biases stay
    # resident in VMEM across the grid).
    return pl.BlockSpec(shape, lambda *_: (0,) * len(shape))


def _cost_estimate(flops, transcendentals, in_arrays, out_bytes):
    bytes_accessed = int(sum(a.size * a.dtype.itemsize for a in in_arrays) + out_bytes)
    return pl.CostEstimate(flops=int(flops), transcendentals=int(transcendentals),
                           bytes_accessed=bytes_accessed)


# -----------------------------------------------------------------------------
# Kernels
# -----------------------------------------------------------------------------
def _mlp3_kernel(x_ref, w1_ref, b1_ref, w2_ref, b2_ref, w3_ref, b3_ref,
                 out_ref, *, final_act):
    # bf16 MXU operands, f32 accumulation, f32 element-wise (v5e-safe).
    h = jnp.dot(x_ref[...], w1_ref[...],
                preferred_element_type=jnp.float32) + b1_ref[...]
    h = _leaky_relu(h)
    h = jnp.dot(h.astype(jnp.bfloat16), w2_ref[...],
                preferred_element_type=jnp.float32) + b2_ref[...]
    h = _leaky_relu(h)
    h = jnp.dot(h.astype(jnp.bfloat16), w3_ref[...],
                preferred_element_type=jnp.float32) + b3_ref[...]
    if final_act == "tanh":
        h = jnp.tanh(h)                          # Generator head (EUP)
    else:
        h = jax.nn.sigmoid(h)                    # Discriminator head (EUP exp/recip)
    out_ref[...] = h.astype(out_ref.dtype)


def _gan_fused_kernel(z_ref,
                      gw1_ref, gb1_ref, gw2_ref, gb2_ref, gw3_ref, gb3_ref,
                      dw1_ref, db1_ref, dw2_ref, db2_ref, dw3_ref, db3_ref,
                      img_ref, score_ref):
    # ---- Generator ----
    h = jnp.dot(z_ref[...], gw1_ref[...],
                preferred_element_type=jnp.float32) + gb1_ref[...]
    h = _leaky_relu(h)
    h = jnp.dot(h.astype(jnp.bfloat16), gw2_ref[...],
                preferred_element_type=jnp.float32) + gb2_ref[...]
    h = _leaky_relu(h)
    img = jnp.tanh(jnp.dot(h.astype(jnp.bfloat16), gw3_ref[...],
                           preferred_element_type=jnp.float32) + gb3_ref[...])
    img_ref[...] = img.astype(img_ref.dtype)

    # ---- Discriminator (generated images stay in VMEM; no HBM round trip) ----
    d = jnp.dot(img.astype(jnp.bfloat16), dw1_ref[...],
                preferred_element_type=jnp.float32) + db1_ref[...]
    d = _leaky_relu(d)
    d = jnp.dot(d.astype(jnp.bfloat16), dw2_ref[...],
                preferred_element_type=jnp.float32) + db2_ref[...]
    d = _leaky_relu(d)
    d = jax.nn.sigmoid(jnp.dot(d.astype(jnp.bfloat16), dw3_ref[...],
                               preferred_element_type=jnp.float32) + db3_ref[...])
    score_ref[...] = d.astype(score_ref.dtype)


# -----------------------------------------------------------------------------
# Wrappers (batch padding, gridded batch axis, parallel semantics)
# -----------------------------------------------------------------------------
def _pad_batch_input(x, in_dim_padded):
    """Zero-pad (B, f) -> (Bp, in_dim_padded) bf16. Returns (x_padded, B, tm, grid)."""
    B = x.shape[0]
    tm = min(_round_up(max(B, 1), _SUBLANE), 256)
    Bp = _round_up(max(B, 1), tm)
    xp = jnp.zeros((Bp, in_dim_padded), jnp.bfloat16)
    xp = xp.at[:B, :x.shape[1]].set(x.astype(jnp.bfloat16))
    return xp, B, tm, Bp // tm


def _run_mlp3(x, params, final_act):
    """x: (B, f_logical). Returns padded (Bp, out_dim_padded) f32; caller slices."""
    w1, b1, w2, b2, w3, b3 = params
    in_dim, hid = w1.shape
    out_dim = w3.shape[1]
    xp, B, tm, grid_m = _pad_batch_input(x, in_dim)
    Bp = xp.shape[0]

    flops = 2 * Bp * (in_dim * hid + hid * hid + hid * out_dim)
    cost = _cost_estimate(flops, Bp * out_dim, (xp, w1, b1, w2, b2, w3, b3),
                          Bp * out_dim * 4)

    out = pl.pallas_call(
        functools.partial(_mlp3_kernel, final_act=final_act),
        out_shape=jax.ShapeDtypeStruct((Bp, out_dim), jnp.float32),
        grid=(grid_m,),
        in_specs=[
            pl.BlockSpec((tm, in_dim), lambda i: (i, 0)),
            _bcast_spec(w1.shape), _bcast_spec(b1.shape),
            _bcast_spec(w2.shape), _bcast_spec(b2.shape),
            _bcast_spec(w3.shape), _bcast_spec(b3.shape),
        ],
        out_specs=pl.BlockSpec((tm, out_dim), lambda i: (i, 0)),
        compiler_params=pltpu.CompilerParams(
            dimension_semantics=("parallel",)),
        cost_estimate=cost,
    )(xp, w1, b1, w2, b2, w3, b3)
    return out, B


def _run_gan_fused(z, gen_params, disc_params):
    gw1, gb1, gw2, gb2, gw3, gb3 = gen_params
    dw1, db1, dw2, db2, dw3, db3 = disc_params
    z_dim_p = gw1.shape[0]
    img_dim_p = gw3.shape[1]
    score_dim_p = dw3.shape[1]
    zp, B, tm, grid_m = _pad_batch_input(z, z_dim_p)
    Bp = zp.shape[0]

    flops = 2 * Bp * (z_dim_p * _HIDDEN + _HIDDEN * _HIDDEN + _HIDDEN * img_dim_p
                      + img_dim_p * _HIDDEN + _HIDDEN * _HIDDEN + _HIDDEN * score_dim_p)
    ins = (zp, gw1, gb1, gw2, gb2, gw3, gb3, dw1, db1, dw2, db2, dw3, db3)
    cost = _cost_estimate(flops, Bp * (img_dim_p + score_dim_p), ins,
                          Bp * (img_dim_p + score_dim_p) * 4)

    img, score = pl.pallas_call(
        _gan_fused_kernel,
        out_shape=(jax.ShapeDtypeStruct((Bp, img_dim_p), jnp.float32),
                   jax.ShapeDtypeStruct((Bp, score_dim_p), jnp.float32)),
        grid=(grid_m,),
        in_specs=[
            pl.BlockSpec((tm, z_dim_p), lambda i: (i, 0)),
            _bcast_spec(gw1.shape), _bcast_spec(gb1.shape),
            _bcast_spec(gw2.shape), _bcast_spec(gb2.shape),
            _bcast_spec(gw3.shape), _bcast_spec(gb3.shape),
            _bcast_spec(dw1.shape), _bcast_spec(db1.shape),
            _bcast_spec(dw2.shape), _bcast_spec(db2.shape),
            _bcast_spec(dw3.shape), _bcast_spec(db3.shape),
        ],
        out_specs=(pl.BlockSpec((tm, img_dim_p), lambda i: (i, 0)),
                   pl.BlockSpec((tm, score_dim_p), lambda i: (i, 0))),
        compiler_params=pltpu.CompilerParams(
            dimension_semantics=("parallel",)),
        cost_estimate=cost,
    )(*ins)
    return img, score, B


# -----------------------------------------------------------------------------
# Deterministic parameter init (kaiming_normal_: std = sqrt(2/fan_in), zero bias),
# stored padded: weights bf16 (MXU operands), biases f32 (added into f32 accum).
# Zero-padded extra rows/cols keep the math identical to the logical shapes.
# -----------------------------------------------------------------------------
def _init_linear(key, fan_in, fan_out, pad_in, pad_out):
    std = math.sqrt(2.0 / fan_in)
    w = jax.random.normal(key, (fan_in, fan_out), dtype=jnp.float32) * std
    w_p = jnp.zeros((pad_in, pad_out), jnp.float32).at[:fan_in, :fan_out].set(w)
    b_p = jnp.zeros((1, pad_out), jnp.float32)
    return w_p.astype(jnp.bfloat16), b_p


def init_generator_params(key, z_dim, out_shape, hidden=_HIDDEN):
    c, h, w = out_shape
    out_dim = c * h * w
    z_pad = _round_up(z_dim, _LANE)
    out_pad = _round_up(out_dim, _LANE)
    k1, k2, k3 = jax.random.split(key, 3)
    w1, b1 = _init_linear(k1, z_dim, hidden, z_pad, hidden)
    w2, b2 = _init_linear(k2, hidden, hidden, hidden, hidden)
    w3, b3 = _init_linear(k3, hidden, out_dim, hidden, out_pad)
    return (w1, b1, w2, b2, w3, b3)


def init_discriminator_params(key, in_shape, hidden=_HIDDEN):
    c, h, w = in_shape
    in_dim = c * h * w
    in_pad = _round_up(in_dim, _LANE)
    out_pad = _LANE   # lane-dense score head; real score is column 0
    k1, k2, k3 = jax.random.split(key, 3)
    w1, b1 = _init_linear(k1, in_dim, hidden, in_pad, hidden)
    w2, b2 = _init_linear(k2, hidden, hidden, hidden, hidden)
    w3, b3 = _init_linear(k3, hidden, 1, hidden, out_pad)
    return (w1, b1, w2, b2, w3, b3)


# -----------------------------------------------------------------------------
# Forward passes (jitted; pad/slice/reshape glue fuses with the custom call)
# -----------------------------------------------------------------------------
@functools.partial(jax.jit, static_argnums=(1, 2, 3))
def generator_forward(key, batch_size, z_dim, out_shape, gen_params):
    # Generator.sample + net. z generation stays on the JAX RNG stream; the
    # zero-padded extra z lanes multiply zero W1 rows, so results are exact.
    c, h, w = out_shape
    out_dim = c * h * w
    z = jax.random.normal(key, (batch_size, z_dim), dtype=jnp.float32)
    flat, B = _run_mlp3(z, gen_params, final_act="tanh")
    return flat[:B, :out_dim].reshape(B, c, h, w)


@jax.jit
def discriminator_forward(images_nchw, disc_params):
    b = images_nchw.shape[0]
    x = images_nchw.reshape(b, -1)                       # flatten(start_dim=1)
    out, B = _run_mlp3(x, disc_params, final_act="sigmoid")
    return out[:B, :1]                                   # logical score column


def gan_forward(key, z_dim, out_shape, gen_params):
    # GAN.forward() returns Generator(1)
    return generator_forward(key, 1, z_dim, out_shape, gen_params)


@functools.partial(jax.jit, static_argnums=(1, 2, 3))
def gan_train_step_forward(key, batch_size, z_dim, out_shape,
                           gen_params, disc_params):
    """Fused G->D path (one pallas_call, images never leave VMEM mid-kernel)."""
    c, h, w = out_shape
    out_dim = c * h * w
    z = jax.random.normal(key, (batch_size, z_dim), dtype=jnp.float32)
    img, score, B = _run_gan_fused(z, gen_params, disc_params)
    return img[:B, :out_dim].reshape(B, c, h, w), score[:B, :1]


# -----------------------------------------------------------------------------
# Pure-JAX reference (same padded bf16 weights / f32 accum) for validation.
# -----------------------------------------------------------------------------
def _mlp3_ref(x, params, final_act):
    w1, b1, w2, b2, w3, b3 = params
    xp = jnp.zeros((x.shape[0], w1.shape[0]), jnp.bfloat16)
    xp = xp.at[:, :x.shape[1]].set(x.astype(jnp.bfloat16))
    h = jnp.dot(xp, w1, preferred_element_type=jnp.float32) + b1
    h = jnp.where(h > 0, h, 0.2 * h)
    h = jnp.dot(h.astype(jnp.bfloat16), w2, preferred_element_type=jnp.float32) + b2
    h = jnp.where(h > 0, h, 0.2 * h)
    h = jnp.dot(h.astype(jnp.bfloat16), w3, preferred_element_type=jnp.float32) + b3
    return jnp.tanh(h) if final_act == "tanh" else jax.nn.sigmoid(h)


if __name__ == "__main__":
    # Small shapes consistent with the module: z_dim=64, hidden=256,
    # image output_shape = [1, 16, 16]  (C, H, W).
    z_dim = 64
    out_shape = (1, 16, 16)
    out_dim = out_shape[0] * out_shape[1] * out_shape[2]

    root = jax.random.PRNGKey(0)
    k_gen, k_disc, k_z, k_zb = jax.random.split(root, 4)

    gen_params = init_generator_params(k_gen, z_dim, out_shape)
    disc_params = init_discriminator_params(k_disc, out_shape)

    # GAN.forward()  ==  Generator(1)
    fake_images = gan_forward(k_z, z_dim, out_shape, gen_params)
    fake_images = jax.block_until_ready(fake_images)
    assert fake_images.shape == (1,) + out_shape, fake_images.shape

    # Validate generator against a pure-JAX reference with the same z.
    z_ref = jax.random.normal(k_z, (1, z_dim), dtype=jnp.float32)
    g_ref = _mlp3_ref(z_ref, gen_params, "tanh")[:, :out_dim].reshape((1,) + out_shape)
    assert bool(jnp.allclose(fake_images, g_ref, atol=2e-3)), "generator mismatch"

    # Discriminator on the generated images (+ reference check).
    scores = discriminator_forward(fake_images, disc_params)
    scores = jax.block_until_ready(scores)
    assert scores.shape == (1, 1), scores.shape
    assert bool(jnp.all((scores >= 0.0) & (scores <= 1.0)))
    d_ref = _mlp3_ref(fake_images.reshape(1, -1), disc_params, "sigmoid")[:, :1]
    assert bool(jnp.allclose(scores, d_ref, atol=2e-3)), "discriminator mismatch"

    # Batched, fused G->D training path (one kernel launch, 6 matmuls).
    imgs_b, scores_b = gan_train_step_forward(k_zb, 8, z_dim, out_shape,
                                              gen_params, disc_params)
    imgs_b = jax.block_until_ready(imgs_b)
    scores_b = jax.block_until_ready(scores_b)
    assert imgs_b.shape == (8,) + out_shape, imgs_b.shape
    assert scores_b.shape == (8, 1), scores_b.shape

    print("KERNEL_OK")
</pallas_src>

<mosaic_0001>
module attributes {stable_mosaic.version = 11 : i64} {
  func.func @_mlp3_kernel(%arg0: i32, %arg1: memref<8x128xbf16, #tpu.memory_space<vmem>>, %arg2: memref<128x256xbf16, #tpu.memory_space<vmem>>, %arg3: memref<1x256xf32, #tpu.memory_space<vmem>>, %arg4: memref<256x256xbf16, #tpu.memory_space<vmem>>, %arg5: memref<1x256xf32, #tpu.memory_space<vmem>>, %arg6: memref<256x256xbf16, #tpu.memory_space<vmem>>, %arg7: memref<1x256xf32, #tpu.memory_space<vmem>>, %arg8: memref<8x256xf32, #tpu.memory_space<vmem>>) attributes {dimension_semantics = [#tpu.dimension_semantics<parallel>], iteration_bounds = array<i64: 1>, scalar_prefetch = 0 : i64, scratch_operands = 0 : i64, tpu.core_type = #tpu.core_type<tc>, window_params = [{transform_indices = @transform_0, window_bounds = array<i64: 8, 128>}, {pipeline_mode = #tpu.pipeline_mode<synchronous>, transform_indices = @transform_1, window_bounds = array<i64: 128, 256>}, {pipeline_mode = #tpu.pipeline_mode<synchronous>, transform_indices = @transform_2, window_bounds = array<i64: 1, 256>}, {pipeline_mode = #tpu.pipeline_mode<synchronous>, transform_indices = @transform_3, window_bounds = array<i64: 256, 256>}, {pipeline_mode = #tpu.pipeline_mode<synchronous>, transform_indices = @transform_4, window_bounds = array<i64: 1, 256>}, {pipeline_mode = #tpu.pipeline_mode<synchronous>, transform_indices = @transform_5, window_bounds = array<i64: 256, 256>}, {pipeline_mode = #tpu.pipeline_mode<synchronous>, transform_indices = @transform_6, window_bounds = array<i64: 1, 256>}, {transform_indices = @transform_7, window_bounds = array<i64: 8, 256>}]} {
    %c0 = arith.constant 0 : index
    %c0_0 = arith.constant 0 : index
    %0 = vector.load %arg1[%c0, %c0_0] : memref<8x128xbf16, #tpu.memory_space<vmem>>, vector<8x128xbf16>
    %c0_1 = arith.constant 0 : index
    %c0_2 = arith.constant 0 : index
    %1 = vector.load %arg2[%c0_1, %c0_2] : memref<128x256xbf16, #tpu.memory_space<vmem>>, vector<128x256xbf16>
    %cst = arith.constant dense<0.000000e+00> : vector<8x256xf32>
    %2 = tpu.matmul %0, %1, %cst {dimension_numbers = #tpu.dot_dimension_numbers<[1], [0], [0], [1], [0, 0, 1, 1], [], []>} : vector<8x128xbf16>, vector<128x256xbf16>, vector<8x256xf32> -> vector<8x256xf32>
    %c0_3 = arith.constant 0 : index
    %c0_4 = arith.constant 0 : index
    %3 = vector.load %arg3[%c0_3, %c0_4] : memref<1x256xf32, #tpu.memory_space<vmem>>, vector<1x256xf32>
    %4 = vector.broadcast %3 : vector<1x256xf32> to vector<8x256xf32>
    %5 = arith.addf %2, %4 : vector<8x256xf32>
    %cst_5 = arith.constant 0.000000e+00 : f32
    %6 = vector.broadcast %cst_5 : f32 to vector<8x256xf32>
    %7 = arith.cmpf ogt, %5, %6 : vector<8x256xf32>
    %cst_6 = arith.constant 2.000000e-01 : f32
    %8 = vector.broadcast %cst_6 : f32 to vector<8x256xf32>
    %9 = arith.mulf %8, %5 : vector<8x256xf32>
    %10 = arith.select %7, %5, %9 : vector<8x256xi1>, vector<8x256xf32>
    %11 = arith.truncf %10 : vector<8x256xf32> to vector<8x256xbf16>
    %c0_7 = arith.constant 0 : index
    %c0_8 = arith.constant 0 : index
    %12 = vector.load %arg4[%c0_7, %c0_8] : memref<256x256xbf16, #tpu.memory_space<vmem>>, vector<256x256xbf16>
    %cst_9 = arith.constant dense<0.000000e+00> : vector<8x256xf32>
    %13 = tpu.matmul %11, %12, %cst_9 {dimension_numbers = #tpu.dot_dimension_numbers<[1], [0], [0], [1], [0, 0, 1, 1], [], []>} : vector<8x256xbf16>, vector<256x256xbf16>, vector<8x256xf32> -> vector<8x256xf32>
    %c0_10 = arith.constant 0 : index
    %c0_11 = arith.constant 0 : index
    %14 = vector.load %arg5[%c0_10, %c0_11] : memref<1x256xf32, #tpu.memory_space<vmem>>, vector<1x256xf32>
    %15 = vector.broadcast %14 : vector<1x256xf32> to vector<8x256xf32>
    %16 = arith.addf %13, %15 : vector<8x256xf32>
    %cst_12 = arith.constant 0.000000e+00 : f32
    %17 = vector.broadcast %cst_12 : f32 to vector<8x256xf32>
    %18 = arith.cmpf ogt, %16, %17 : vector<8x256xf32>
    %cst_13 = arith.constant 2.000000e-01 : f32
    %19 = vector.broadcast %cst_13 : f32 to vector<8x256xf32>
    %20 = arith.mulf %19, %16 : vector<8x256xf32>
    %21 = arith.select %18, %16, %20 : vector<8x256xi1>, vector<8x256xf32>
    %22 = arith.truncf %21 : vector<8x256xf32> to vector<8x256xbf16>
    %c0_14 = arith.constant 0 : index
    %c0_15 = arith.constant 0 : index
    %23 = vector.load %arg6[%c0_14, %c0_15] : memref<256x256xbf16, #tpu.memory_space<vmem>>, vector<256x256xbf16>
    %cst_16 = arith.constant dense<0.000000e+00> : vector<8x256xf32>
    %24 = tpu.matmul %22, %23, %cst_16 {dimension_numbers = #tpu.dot_dimension_numbers<[1], [0], [0], [1], [0, 0, 1, 1], [], []>} : vector<8x256xbf16>, vector<256x256xbf16>, vector<8x256xf32> -> vector<8x256xf32>
    %c0_17 = arith.constant 0 : index
    %c0_18 = arith.constant 0 : index
    %25 = vector.load %arg7[%c0_17, %c0_18] : memref<1x256xf32, #tpu.memory_space<vmem>>, vector<1x256xf32>
    %26 = vector.broadcast %25 : vector<1x256xf32> to vector<8x256xf32>
    %27 = arith.addf %24, %26 : vector<8x256xf32>
    %28 = math.tanh %27 : vector<8x256xf32>
    %c0_19 = arith.constant 0 : index
    %c0_20 = arith.constant 0 : index
    %29 = vector.load %arg8[%c0_19, %c0_20] : memref<8x256xf32, #tpu.memory_space<vmem>>, vector<8x256xf32>
    tpu.vector_store %arg8[%c0_19, %c0_20], %28 {strides = array<i32>} : memref<8x256xf32, #tpu.memory_space<vmem>>, vector<8x256xf32>,
    return
  }
  func.func @transform_0(%arg0: i32) -> (i32, i32) {
    %c0_i32 = arith.constant 0 : i32
    %c0_i32_0 = arith.constant 0 : i32
    return %arg0, %c0_i32 : i32, i32
  }
  func.func @transform_1(%arg0: i32) -> (i32, i32) {
    %c0_i32 = arith.constant 0 : i32
    %c0_i32_0 = arith.constant 0 : i32
    %c0_i32_1 = arith.constant 0 : i32
    return %c0_i32, %c0_i32_0 : i32, i32
  }
  func.func @transform_2(%arg0: i32) -> (i32, i32) {
    %c0_i32 = arith.constant 0 : i32
    %c0_i32_0 = arith.constant 0 : i32
    %c0_i32_1 = arith.constant 0 : i32
    return %c0_i32, %c0_i32_0 : i32, i32
  }
  func.func @transform_3(%arg0: i32) -> (i32, i32) {
    %c0_i32 = arith.constant 0 : i32
    %c0_i32_0 = arith.constant 0 : i32
    %c0_i32_1 = arith.constant 0 : i32
    return %c0_i32, %c0_i32_0 : i32, i32
  }
  func.func @transform_4(%arg0: i32) -> (i32, i32) {
    %c0_i32 = arith.constant 0 : i32
    %c0_i32_0 = arith.constant 0 : i32
    %c0_i32_1 = arith.constant 0 : i32
    return %c0_i32, %c0_i32_0 : i32, i32
  }
  func.func @transform_5(%arg0: i32) -> (i32, i32) {
    %c0_i32 = arith.constant 0 : i32
    %c0_i32_0 = arith.constant 0 : i32
    %c0_i32_1 = arith.constant 0 : i32
    return %c0_i32, %c0_i32_0 : i32, i32
  }
  func.func @transform_6(%arg0: i32) -> (i32, i32) {
    %c0_i32 = arith.constant 0 : i32
    %c0_i32_0 = arith.constant 0 : i32
    %c0_i32_1 = arith.constant 0 : i32
    return %c0_i32, %c0_i32_0 : i32, i32
  }
  func.func @transform_7(%arg0: i32) -> (i32, i32) {
    %c0_i32 = arith.constant 0 : i32
    %c0_i32_0 = arith.constant 0 : i32
    return %arg0, %c0_i32 : i32, i32
  }
}

</mosaic_0001>

<bundles_post_ra>
// kernel: generator_forward.1
= control target key start
LH: loop header
LB: loop body
LE: loop exit
PB: predicated region body
PF: predicated region fallthrough
CT: control target
= control target key end

     0   :  { %12 = vsyncpa [#allocation3], 0  ;;  %s1130_s0 = inlined_call_operand.vmem [shape: bf16[8,128], index: 0, kind: input, shape index: {}]   ;;  %s1131_s1 = inlined_call_operand.hbm [shape: bf16[128,256], index: 1, kind: input, shape index: {}]   ;;  %s1132_s2 = inlined_call_operand.vmem [shape: f32[1,256], index: 2, kind: input, shape index: {}]   ;;  %s1133_s3 = inlined_call_operand.hbm [shape: bf16[256,256], index: 3, kind: input, shape index: {}]   ;;  %s1134_s4 = inlined_call_operand.vmem [shape: f32[1,256], index: 4, kind: input, shape index: {}]   ;;  %s1135_s5 = inlined_call_operand.hbm [shape: bf16[256,256], index: 5, kind: input, shape index: {}]   ;;  %s1136_s6 = inlined_call_operand.vmem [shape: f32[1,256], index: 6, kind: input, shape index: {}]   ;;  %s1137_s7 = inlined_call_operand.vmem [shape: f32[8,256], index: 7, kind: output, shape index: {}]  }
   0x1   :  { %13 = vsyncpa [#allocation5], 0  ;;  %s1014_s24 = smov [#allocation4]   ;;  %s1015_s26 = smov [#allocation2]  }
   0x2   :  { %s35_s25 = sshll.u32 %s1014_s24, 4  ;;  %s21_s27 = sshll.u32 %s1015_s26, 4  ;;  %s36_s25 = int_to_ptr.vmem [resolvable:$true] %s35_s25  ;;  %s1060_s27 = int_to_ptr.vmem [resolvable:$true] %s21_s27 }
   0x3   :  { %s944_s30 = scalar_lea.hbm %s1133_s3, 4096 }
   0x4   :  { %p945_p0 = scmp.ne.s32.totalorder %s1133_s3, %s944_s30  ;;  %p948_p1 = scmp.lt.u32.totalorder %s944_s30, %s1133_s3 }
   0x6   :  { %p950_p2 = pnand %p948_p1, %p945_p0 }
   0x8   :  { %953 = shalt.err (!%p950_p2)
}
   0x9   :  { %s954_s12 = scalar_lea.vmem %s36_s25, 4096  ;;  %p959_p4 = scmp.lt.s32.totalorder %s36_s25, %s36_s25 }
   0xa   :  { %p955_p3 = scmp.ne.s32.totalorder %s36_s25, %s954_s12  ;;  %p960_p5 = scmp.lt.s32.totalorder %s954_s12, %s954_s12 }
   0xc   :  { %p961_p6 = por %p960_p5, %p959_p4 }
   0xe   :  { %p962_p7 = pnand %p961_p6, %p955_p3 }
  0x10   :  { %965 = shalt.err (!%p962_p7)
}
  0x11   :  { %s1016_s13 = smov 128   ;;  %s1017_s14 = smov 8  }
  0x12   :  { %41 = dma.hbm_to_vmem [thread:$0]  %s1133_s3, 4096, %s36_s25, [#allocation5], %s1016_s13, %s1016_s13, %s1017_s14  }
  0x13   :  { %s966_s19 = scalar_lea.hbm %s1131_s1, 2048 }
  0x14   :  { %p967_p8 = scmp.ne.s32.totalorder %s1131_s1, %s966_s19  ;;  %p970_p9 = scmp.lt.u32.totalorder %s966_s19, %s1131_s1 }
  0x16   :  { %p972_p10 = pnand %p970_p9, %p967_p8 }
  0x18   :  { %975 = shalt.err (!%p972_p10)
}
  0x19   :  { %s976_s24 = scalar_lea.vmem %s1060_s27, 2048  ;;  %p981_p12 = scmp.lt.s32.totalorder %s1060_s27, %s1060_s27 }
  0x1a   :  { %p977_p11 = scmp.ne.s32.totalorder %s1060_s27, %s976_s24  ;;  %p982_p13 = scmp.lt.s32.totalorder %s976_s24, %s976_s24 }
  0x1c   :  { %p983_p0 = por %p982_p13, %p981_p12 }
  0x1e   :  { %p984_p1 = pnand %p983_p0, %p977_p11 }
  0x20   :  { %987 = shalt.err (!%p984_p1)
}
  0x21   :  { %27 = dma.hbm_to_vmem [thread:$0]  %s1131_s1, 2048, %s1060_s27, [#allocation3], %s1016_s13, %s1016_s13, %s1017_s14  }
  0x22   :  { %s1018_s26 = smov [#allocation6]   ;;  %s988_s8 = scalar_lea.hbm %s1135_s5, 4096 }
  0x23   :  { %s49_s28 = sshll.u32 %s1018_s26, 4  ;;  %p989_p2 = scmp.ne.s32.totalorder %s1135_s5, %s988_s8  ;;  %s50_s28 = int_to_ptr.vmem [resolvable:$true] %s49_s28 }
  0x24   :  { %p992_p3 = scmp.lt.u32.totalorder %s988_s8, %s1135_s5 }
  0x26   :  { %p994_p4 = pnand %p992_p3, %p989_p2 }
  0x28   :  { %997 = shalt.err (!%p994_p4)
}
  0x29   :  { %s998_s15 = scalar_lea.vmem %s50_s28, 4096  ;;  %p1003_p6 = scmp.lt.s32.totalorder %s50_s28, %s50_s28 }
  0x2a   :  { %p999_p5 = scmp.ne.s32.totalorder %s50_s28, %s998_s15  ;;  %p1004_p7 = scmp.lt.s32.totalorder %s998_s15, %s998_s15 }
  0x2c   :  { %p1005_p8 = por %p1004_p7, %p1003_p6 }
  0x2e   :  { %p1006_p9 = pnand %p1005_p8, %p999_p5 }
  0x30   :  { %1009 = shalt.err (!%p1006_p9)
}
  0x31   :  { %55 = dma.hbm_to_vmem [thread:$0]  %s1135_s5, 4096, %s50_s28, [#allocation5], %s1016_s13, %s1016_s13, %s1017_s14  }
  0x32   :  { %1010 = dma.done.wait [#allocation3], 2048  }
  0x33   :  { %1011 = vsyncadd [#allocation3], 4294965248 }
  0x34   :  { %1012 = dma.done.wait [#allocation5], 8192  }
  0x35   :  { %1013 = vsyncadd [#allocation5], 4294959104  ;;  %v1019_v0 = vmov 0   ;;  %v820_v1 = vld [vmem:[#allocation2 + $0x4] ss:$8 sps:$4 sm:$0xff]  }
  0x36   :  { %209 = vmatprep.mubr.bf16.mxu0 %v1019_v0  ;;  %v822_v2 = vld [vmem:[#allocation2] ss:$8 sps:$4 sm:$0xff]   ;;  %177 = vmatprep.subr.bf16.mxu0 %v820_v1  ;;  %v823_v3 = vld [vmem:[#allocation2 + $0x14] ss:$8 sps:$4 sm:$0xff]   ;;  %v825_v4 = vld [vmem:[#allocation2 + $0x10] ss:$8 sps:$4 sm:$0xff]  }
  0x37   :  { %178 = vmatpush1.bf16.msra.mxu0 %v822_v2  ;;  %v826_v5 = vld [vmem:[#allocation2 + $0x24] ss:$8 sps:$4 sm:$0xff]   ;;  %v828_v6 = vld [vmem:[#allocation2 + $0x20] ss:$8 sps:$4 sm:$0xff]   ;;  %v829_v7 = vld [vmem:[#allocation2 + $0x34] ss:$8 sps:$4 sm:$0xff]  }
  0x38   :  { %179 = vmatprep.subr.bf16.mxu0 %v823_v3  ;;  %v831_v8 = vld [vmem:[#allocation2 + $0x30] ss:$8 sps:$4 sm:$0xff]   ;;  %v832_v9 = vld [vmem:[#allocation2 + $0x44] ss:$8 sps:$4 sm:$0xff]   ;;  %v846_v11 = vld [vmem:[#allocation4] ss:$8 sps:$4 sm:$0xff]  }
  0x39   :  { %v844_v10 = vld [vmem:[#allocation4 + $0x4] ss:$8 sps:$4 sm:$0xff]   ;;  %v847_v12 = vld [vmem:[#allocation4 + $0x14] ss:$8 sps:$4 sm:$0xff]   ;;  %v834_v13 = vld [vmem:[#allocation2 + $0x40] ss:$8 sps:$4 sm:$0xff]  }
  0x3a   :  { %430 = vmatprep.subr.bf16.mxu1 %v844_v10  ;;  %v849_v14 = vld [vmem:[#allocation4 + $0x10] ss:$8 sps:$4 sm:$0xff]   ;;  %v850_v15 = vld [vmem:[#allocation4 + $0x24] ss:$8 sps:$4 sm:$0xff]   ;;  %v835_v16 = vld [vmem:[#allocation2 + $0x54] ss:$8 sps:$4 sm:$0xff]  }
  0x3b   :  { %180 = vmatpush1.bf16.msra.mxu0 %v825_v4  ;;  %431 = vmatpush1.bf16.msra.mxu1 %v846_v11  ;;  %v837_v17 = vld [vmem:[#allocation2 + $0x50] ss:$8 sps:$4 sm:$0xff]   ;;  %v852_v18 = vld [vmem:[#allocation4 + $0x20] ss:$8 sps:$4 sm:$0xff]   ;;  %v853_v19 = vld [vmem:[#allocation4 + $0x34] ss:$8 sps:$4 sm:$0xff]  }
  0x3c   :  { %181 = vmatprep.subr.bf16.mxu0 %v826_v5  ;;  %432 = vmatprep.subr.bf16.mxu1 %v847_v12  ;;  %v838_v20 = vld [vmem:[#allocation2 + $0x64] ss:$8 sps:$4 sm:$0xff]   ;;  %v840_v21 = vld [vmem:[#allocation2 + $0x60] ss:$8 sps:$4 sm:$0xff]   ;;  %v855_v22 = vld [vmem:[#allocation4 + $0x30] ss:$8 sps:$4 sm:$0xff]  }
  0x3d   :  { %v856_v23 = vld [vmem:[#allocation4 + $0x44] ss:$8 sps:$4 sm:$0xff]   ;;  %v841_v24 = vld [vmem:[#allocation2 + $0x74] ss:$8 sps:$4 sm:$0xff]   ;;  %v843_v25 = vld [vmem:[#allocation2 + $0x70] ss:$8 sps:$4 sm:$0xff]  }
  0x3e   :  { %v858_v26 = vld [vmem:[#allocation4 + $0x40] ss:$8 sps:$4 sm:$0xff]   ;;  %v859_v27 = vld [vmem:[#allocation4 + $0x54] ss:$8 sps:$4 sm:$0xff]   ;;  %v861_v29 = vld [vmem:[#allocation4 + $0x50] ss:$8 sps:$4 sm:$0xff]  }
  0x3f   :  { %182 = vmatpush1.bf16.msra.mxu0 %v828_v6  ;;  %433 = vmatpush1.bf16.msra.mxu1 %v849_v14  ;;  %v68_v28 = vld [vmem:[%s1130_s0] sm:$0xf]  ;;  %v862_v30 = vld [vmem:[#allocation4 + $0x64] ss:$8 sps:$4 sm:$0xff]   ;;  %v865_v32 = vld [vmem:[#allocation4 + $0x74] ss:$8 sps:$4 sm:$0xff]   ;;  %v87_v14 = vlaneseq }
  0x40   :  { %183 = vmatprep.subr.bf16.mxu0 %v829_v7  ;;  %434 = vmatprep.subr.bf16.mxu1 %v850_v15  ;;  %v864_v31 = vld [vmem:[#allocation4 + $0x60] ss:$8 sps:$4 sm:$0xff]   ;;  %v867_v33 = vld [vmem:[#allocation4 + $0x70] ss:$8 sps:$4 sm:$0xff]   ;;  %v868_v34 = vld [vmem:[#allocation4 + $0x84] ss:$8 sps:$4 sm:$0xff]  }
  0x41   :  { %v870_v35 = vld [vmem:[#allocation4 + $0x80] ss:$8 sps:$4 sm:$0xff]   ;;  %v871_v36 = vld [vmem:[#allocation4 + $0x94] ss:$8 sps:$4 sm:$0xff]   ;;  %v873_v37 = vld [vmem:[#allocation4 + $0x90] ss:$8 sps:$4 sm:$0xff]  }
  0x42   :  { %v874_v38 = vld [vmem:[#allocation4 + $0xa4] ss:$8 sps:$4 sm:$0xff]   ;;  %v876_v39 = vld [vmem:[#allocation4 + $0xa0] ss:$8 sps:$4 sm:$0xff]   ;;  %v877_v40 = vld [vmem:[#allocation4 + $0xb4] ss:$8 sps:$4 sm:$0xff]  }
  0x43   :  { %184 = vmatpush1.bf16.msra.mxu0 %v831_v8  ;;  %435 = vmatpush1.bf16.msra.mxu1 %v852_v18  ;;  %v879_v41 = vld [vmem:[#allocation4 + $0xb0] ss:$8 sps:$4 sm:$0xff]   ;;  %v880_v42 = vld [vmem:[#allocation4 + $0xc4] ss:$8 sps:$4 sm:$0xff]   ;;  %v882_v43 = vld [vmem:[#allocation4 + $0xc0] ss:$8 sps:$4 sm:$0xff]  }
  0x44   :  { %185 = vmatprep.subr.bf16.mxu0 %v832_v9  ;;  %436 = vmatprep.subr.bf16.mxu1 %v853_v19  ;;  %v883_v44 = vld [vmem:[#allocation4 + $0xd4] ss:$8 sps:$4 sm:$0xff]   ;;  %v885_v45 = vld [vmem:[#allocation4 + $0xd0] ss:$8 sps:$4 sm:$0xff]   ;;  %v886_v46 = vld [vmem:[#allocation4 + $0xe4] ss:$8 sps:$4 sm:$0xff]  }
  0x45   :  { %v888_v47 = vld [vmem:[#allocation4 + $0xe0] ss:$8 sps:$4 sm:$0xff]   ;;  %v889_v48 = vld [vmem:[#allocation4 + $0xf4] ss:$8 sps:$4 sm:$0xff]   ;;  %v891_v49 = vld [vmem:[#allocation4 + $0xf0] ss:$8 sps:$4 sm:$0xff]  }
  0x46   :  { %v892_v50 = vld [vmem:[#allocation6] ss:$8 sps:$4 sm:$0xff]   ;;  %v894_v51 = vld [vmem:[#allocation6 + $0x4] ss:$8 sps:$4 sm:$0xff]   ;;  %v897_v52 = vld [vmem:[#allocation6 + $0x14] ss:$8 sps:$4 sm:$0xff]  }
  0x47   :  { %186 = vmatpush1.bf16.msra.mxu0 %v834_v13  ;;  %437 = vmatpush1.bf16.msra.mxu1 %v855_v22  ;;  %v895_v53 = vld [vmem:[#allocation6 + $0x10] ss:$8 sps:$4 sm:$0xff]   ;;  %v900_v54 = vld [vmem:[#allocation6 + $0x24] ss:$8 sps:$4 sm:$0xff]   ;;  %v898_v55 = vld [vmem:[#allocation6 + $0x20] ss:$8 sps:$4 sm:$0xff]  }
  0x48   :  { %187 = vmatprep.subr.bf16.mxu0 %v835_v16  ;;  %438 = vmatprep.subr.bf16.mxu1 %v856_v23  ;;  %v903_v56 = vld [vmem:[#allocation6 + $0x34] ss:$8 sps:$4 sm:$0xff]   ;;  %v901_v57 = vld [vmem:[#allocation6 + $0x30] ss:$8 sps:$4 sm:$0xff]   ;;  %v906_v58 = vld [vmem:[#allocation6 + $0x44] ss:$8 sps:$4 sm:$0xff]  }
  0x49   :  { %v904_v59 = vld [vmem:[#allocation6 + $0x40] ss:$8 sps:$4 sm:$0xff]   ;;  %v909_v60 = vld [vmem:[#allocation6 + $0x54] ss:$8 sps:$4 sm:$0xff]   ;;  %v907_v61 = vld [vmem:[#allocation6 + $0x50] ss:$8 sps:$4 sm:$0xff]  }
  0x4a   :  { %v912_v62 = vld [vmem:[#allocation6 + $0x64] ss:$8 sps:$4 sm:$0xff]   ;;  %v910_v63 = vld [vmem:[#allocation6 + $0x60] ss:$8 sps:$4 sm:$0xff]   ;;  %v915_v0 = vld [vmem:[#allocation6 + $0x74] ss:$8 sps:$4 sm:$0xff]  }
  0x4b   :  { %188 = vmatpush1.bf16.msra.mxu0 %v837_v17  ;;  %439 = vmatpush1.bf16.msra.mxu1 %v858_v26  ;;  %v913_v1 = vld [vmem:[#allocation6 + $0x70] ss:$8 sps:$4 sm:$0xff]   ;;  %v918_v2 = vld [vmem:[#allocation6 + $0x84] ss:$8 sps:$4 sm:$0xff]   ;;  %v916_v3 = vld [vmem:[#allocation6 + $0x80] ss:$8 sps:$4 sm:$0xff]  }
  0x4c   :  { %189 = vmatprep.subr.bf16.mxu0 %v838_v20  ;;  %440 = vmatprep.subr.bf16.mxu1 %v859_v27  ;;  %v921_v4 = vld [vmem:[#allocation6 + $0x94] ss:$8 sps:$4 sm:$0xff]   ;;  %v919_v5 = vld [vmem:[#allocation6 + $0x90] ss:$8 sps:$4 sm:$0xff]   ;;  %v924_v6 = vld [vmem:[#allocation6 + $0xa4] ss:$8 sps:$4 sm:$0xff]  }
  0x4d   :  { %v922_v7 = vld [vmem:[#allocation6 + $0xa0] ss:$8 sps:$4 sm:$0xff]   ;;  %v927_v8 = vld [vmem:[#allocation6 + $0xb4] ss:$8 sps:$4 sm:$0xff]   ;;  %v925_v9 = vld [vmem:[#allocation6 + $0xb0] ss:$8 sps:$4 sm:$0xff]  }
  0x4e   :  { %v930_v10 = vld [vmem:[#allocation6 + $0xc4] ss:$8 sps:$4 sm:$0xff]   ;;  %v928_v11 = vld [vmem:[#allocation6 + $0xc0] ss:$8 sps:$4 sm:$0xff]   ;;  %v933_v12 = vld [vmem:[#allocation6 + $0xd4] ss:$8 sps:$4 sm:$0xff]  }
  0x4f   :  { %190 = vmatpush1.bf16.msra.mxu0 %v840_v21  ;;  %441 = vmatpush1.bf16.msra.mxu1 %v861_v29  ;;  %v931_v13 = vld [vmem:[#allocation6 + $0xd0] ss:$8 sps:$4 sm:$0xff]   ;;  %v88_v15 = vshrl.u32 %v87_v14, 7  ;;  %v85_v17 = vld [vmem:[%s1132_s2] sm:$0x3] }
  0x50   :  { %191 = vmatprep.subr.bf16.mxu0 %v841_v24  ;;  %442 = vmatprep.subr.bf16.mxu1 %v862_v30 }
  0x51   :  { %v89_v16 = vsub.s32 0, %v88_v15  ;;  %v93_v18 = vsub.s32 1, %v88_v15 }
  0x53   :  { %192 = vmatpush1.bf16.msra.mxu0 %v843_v25  ;;  %443 = vmatpush1.bf16.msra.mxu1 %v864_v31  ;;  %v90_v19 = vrot.slane %v85_v17, %v89_v16  ;;  %v94_v20 = vrot.slane %v85_v17, %v93_v18 }
  0x54   :  { %444 = vmatprep.subr.bf16.mxu1 %v865_v32  ;;  %683 = vmatprep.subr.bf16.mxu0 %v894_v51 }
  0x56   :  { %210 = vmatmul.mubr.bf16.vlgmr.msra.gmra.mrb[0].mxu0 %v68_v28 }
  0x57   :  { %445 = vmatpush1.bf16.msra.mxu1 %v867_v33  ;;  %684 = vmatpush1.bf16.msra.mxu0 %v892_v50  ;;  %v936_v33 = vld [vmem:[#allocation6 + $0xe4] ss:$8 sps:$4 sm:$0xff]  }
  0x58   :  { %446 = vmatprep.subr.bf16.mxu1 %v868_v34  ;;  %685 = vmatprep.subr.bf16.mxu0 %v897_v52  ;;  %v934_v34 = vld [vmem:[#allocation6 + $0xe0] ss:$8 sps:$4 sm:$0xff]  }
  0x59   :  { %v511_v52 = vld [vmem:[%s1136_s6] sm:$0x3] }
  0x5b   :  { %447 = vmatpush1.bf16.msra.mxu1 %v870_v35  ;;  %686 = vmatpush1.bf16.msra.mxu0 %v895_v53  ;;  %v939_v35 = vld [vmem:[#allocation6 + $0xf4] ss:$8 sps:$4 sm:$0xff]   ;;  %v516_v53 = vrot.slane %v511_v52, %v89_v16 }
  0x5c   :  { %448 = vmatprep.subr.bf16.mxu1 %v871_v36  ;;  %687 = vmatprep.subr.bf16.mxu0 %v900_v54  ;;  %v937_v36 = vld [vmem:[#allocation6 + $0xf0] ss:$8 sps:$4 sm:$0xff]   ;;  %v520_v54 = vrot.slane %v511_v52, %v93_v18 }
  0x5f   :  { %449 = vmatpush1.bf16.msra.mxu1 %v873_v37  ;;  %688 = vmatpush1.bf16.msra.mxu0 %v898_v55  ;;  %v258_v37 = vld [vmem:[%s1134_s4] sm:$0x3] }
  0x60   :  { %450 = vmatprep.subr.bf16.mxu1 %v874_v38  ;;  %689 = vmatprep.subr.bf16.mxu0 %v903_v56  ;;  %v263_v38 = vrot.slane %v258_v37, %v89_v16 }
  0x63   :  { %451 = vmatpush1.bf16.msra.mxu1 %v876_v39  ;;  %690 = vmatpush1.bf16.msra.mxu0 %v901_v57  ;;  %v267_v39 = vrot.slane %v258_v37, %v93_v18 }
  0x64   :  { %452 = vmatprep.subr.bf16.mxu1 %v877_v40  ;;  %691 = vmatprep.subr.bf16.mxu0 %v906_v58 }
  0x67   :  { %453 = vmatpush1.bf16.msra.mxu1 %v879_v41  ;;  %692 = vmatpush1.bf16.msra.mxu0 %v904_v59 }
  0x68   :  { %454 = vmatprep.subr.bf16.mxu1 %v880_v42  ;;  %693 = vmatprep.subr.bf16.mxu0 %v909_v60 }
  0x6b   :  { %455 = vmatpush1.bf16.msra.mxu1 %v882_v43  ;;  %694 = vmatpush1.bf16.msra.mxu0 %v907_v61 }
  0x6c   :  { %456 = vmatprep.subr.bf16.mxu1 %v883_v44  ;;  %695 = vmatprep.subr.bf16.mxu0 %v912_v62 }
  0x6f   :  { %457 = vmatpush1.bf16.msra.mxu1 %v885_v45  ;;  %696 = vmatpush1.bf16.msra.mxu0 %v910_v63 }
  0x70   :  { %458 = vmatprep.subr.bf16.mxu1 %v886_v46  ;;  %697 = vmatprep.subr.bf16.mxu0 %v915_v0 }
  0x73   :  { %459 = vmatpush1.bf16.msra.mxu1 %v888_v47  ;;  %698 = vmatpush1.bf16.msra.mxu0 %v913_v1 }
  0x74   :  { %460 = vmatprep.subr.bf16.mxu1 %v889_v48  ;;  %699 = vmatprep.subr.bf16.mxu0 %v918_v2 }
  0x77   :  { %461 = vmatpush1.bf16.msra.mxu1 %v891_v49  ;;  %700 = vmatpush1.bf16.msra.mxu0 %v916_v3 }
  0x78   :  { %701 = vmatprep.subr.bf16.mxu0 %v921_v4 }
  0x7b   :  { %702 = vmatpush1.bf16.msra.mxu0 %v919_v5 }
  0x7c   :  { %703 = vmatprep.subr.bf16.mxu0 %v924_v6 }
  0x7f   :  { %704 = vmatpush1.bf16.msra.mxu0 %v922_v7 }
  0x80   :  { %705 = vmatprep.subr.bf16.mxu0 %v927_v8 }
  0x83   :  { %706 = vmatpush1.bf16.msra.mxu0 %v925_v9 }
  0x84   :  { %707 = vmatprep.subr.bf16.mxu0 %v930_v10 }
  0x87   :  { %708 = vmatpush1.bf16.msra.mxu0 %v928_v11 }
  0x88   :  { %709 = vmatprep.subr.bf16.mxu0 %v933_v12 }
  0x8b   :  { %710 = vmatpush1.bf16.msra.mxu0 %v931_v13 }
  0x8c   :  { %711 = vmatprep.subr.bf16.mxu0 %v936_v33 }
  0x8f   :  { %712 = vmatpush1.bf16.msra.mxu0 %v934_v34 }
  0x90   :  { %713 = vmatprep.subr.bf16.mxu0 %v939_v35 }
  0x93   :  { %714 = vmatpush1.bf16.msra.mxu0 %v937_v36 }
 0x129   :  { %v211_v21 = vpop.f32.mrb[0].mxu0 }
 0x12a   :  { %v212_v22 = vadd.f32 %v211_v21, %v90_v19  ;;  %v213_v23 = vpop.f32.mrb[1].mxu0 }
 0x12b   :  { %v214_v24 = vadd.f32 %v213_v23, %v94_v20  ;;  %v215_v25 = vpop.f32.mrb[2].mxu0 }
 0x12c   :  { %vm218_vm0 = vcmp.gt.f32.partialorder %v212_v22, 0.0  ;;  %v220_v26 = vmul.f32 0.2, %v212_v22  ;;  %v216_v27 = vpop.f32.mrb[3].mxu0 }
 0x12d   :  { %vm219_vm1 = vcmp.gt.f32.partialorder %v214_v24, 0.0  ;;  %v221_v28 = vmul.f32 0.2, %v214_v24 }
 0x12e   :  { %v222_v29 = vsel %vm218_vm0, %v212_v22, %v220_v26 }
 0x12f   :  { %v223_v30 = vsel %vm219_vm1, %v214_v24, %v221_v28  ;;  %v224_v32 = vpack.c.bf16 %v222_v29, %v222_v29 }
 0x130   :  { %v225_v31 = vpack.c.bf16 %v223_v30, %v223_v30 }
 0x132   :  { %462 = vmatprep.mubr.bf16.mxu1 %v225_v31 }
 0x133   :  { %463 = vmatmul.mubr.bf16.vlgmr.msra.gmra.mrb[0].mxu1 %v224_v32 }
 0x206   :  { %v464_v40 = vpop.f32.mrb[0].mxu1 }
 0x207   :  { %v465_v41 = vadd.f32 %v464_v40, %v263_v38  ;;  %v466_v42 = vpop.f32.mrb[1].mxu1 }
 0x208   :  { %v467_v43 = vadd.f32 %v466_v42, %v267_v39  ;;  %v468_v44 = vpop.f32.mrb[2].mxu1 }
 0x209   :  { %vm471_vm2 = vcmp.gt.f32.partialorder %v465_v41, 0.0  ;;  %v473_v45 = vmul.f32 0.2, %v465_v41  ;;  %v469_v46 = vpop.f32.mrb[3].mxu1 }
 0x20a   :  { %vm472_vm3 = vcmp.gt.f32.partialorder %v467_v43, 0.0  ;;  %v474_v47 = vmul.f32 0.2, %v467_v43 }
 0x20b   :  { %v475_v48 = vsel %vm471_vm2, %v465_v41, %v473_v45 }
 0x20c   :  { %v476_v49 = vsel %vm472_vm3, %v467_v43, %v474_v47  ;;  %v477_v51 = vpack.c.bf16 %v475_v48, %v475_v48 }
 0x20d   :  { %v478_v50 = vpack.c.bf16 %v476_v49, %v476_v49 }
 0x20f   :  { %715 = vmatprep.mubr.bf16.mxu0 %v478_v50 }
 0x210   :  { %716 = vmatmul.mubr.bf16.vlgmr.msra.gmra.mrb[4].mxu0 %v477_v51 }
 0x2e3   :  { %v717_v55 = vpop.f32.mrb[4].mxu0 }
 0x2e4   :  { %v718_v56 = vadd.f32 %v717_v55, %v516_v53  ;;  %v719_v57 = vpop.f32.mrb[5].mxu0 }
 0x2e5   :  { %v720_v58 = vadd.f32 %v719_v57, %v520_v54  ;;  %v721_v59 = vpop.f32.mrb[6].mxu0 }
 0x2e6   :  { %940 = vtanh.f32 %v718_v56  ;;  %v722_v60 = vpop.f32.mrb[7].mxu0 }
 0x2e7   :  { %942 = vtanh.f32 %v720_v58 }
 0x2f0   :  { %v941_v61 = vpop.eup %940 }
 0x2f1   :  { %v943_v62 = vpop.eup %942  ;;  %726 = vst [vmem:[%s1137_s7] sm:$0xff] %v941_v61 }
 0x2f2   :  { %727 = vst [vmem:[%s1137_s7 + $0x8] sm:$0xff] %v943_v62 }
 0x2f3   :  { %732 = vsyncpa [#allocation3], 1 }
 0x2f4   :  { %733 = vsyncpa [#allocation5], 1 }

</bundles_post_ra>
